<compile_context>
chip_gen: v7x
topology: tpu7x:2x2x1
jax: 0.10.0
libtpu: 0.0.40
codegen_flags: <defaults>
</compile_context>

<pallas_src>
import functools

import jax
import jax.numpy as jnp
from jax import lax
from jax.experimental import pallas as pl
from jax.experimental.pallas import tpu as pltpu

FEAT_DIM = 32      # P['feat_dim']
Z_DIM = 16         # P['z_dim']
NUM_CLASSES = 8    # P['num_classes']
SLAB_LANES = 32    # packed parameter slab lane width (widest block is FEAT_DIM)
OUT_LANES = 128    # fused output slab lane width (lane-dense store)


# ---------------------------------------------------------------------------
# numerics
# ---------------------------------------------------------------------------
def _log1p_accurate(t):
    # Goldberg's trick: accurate log(1 + t) for t >= 0 using only log / add / div.
    u = 1.0 + t
    d = jnp.where(u == 1.0, 1.0, u - 1.0)
    return jnp.where(u == 1.0, t, jnp.log(u) * (t / d))


def _softplus(x):
    # matches torch.nn.functional.softplus (beta=1, threshold=20)
    t = jnp.exp(-jnp.abs(x))
    return jnp.where(x > 20.0, x, jnp.maximum(x, 0.0) + _log1p_accurate(t))


# ---------------------------------------------------------------------------
# packed parameter slab layout
# ---------------------------------------------------------------------------
def _make_layout(in_channels):
    """name -> (row_start, nrows, ncols); every block starts on an 8-row
    (sublane) boundary and at lane 0 of the (rows, SLAB_LANES) slab."""
    blocks = [
        ("conv",      FEAT_DIM, in_channels + 1),   # conv_w^T (F,C) | conv_b column
        ("p1_w",      FEAT_DIM, FEAT_DIM),          # proj[0] weight (in, out)
        ("p1_b",      1,        FEAT_DIM),
        ("p2_mu_w",   FEAT_DIM, Z_DIM),             # proj[2] split: mu half
        ("p2_std_w",  FEAT_DIM, Z_DIM),             # proj[2] split: std half
        ("p2_mu_b",   1,        Z_DIM),
        ("p2_std_b",  1,        Z_DIM),
        ("cls_w",     Z_DIM,    NUM_CLASSES),       # linear_classifier
        ("dec_a_w",   Z_DIM,    NUM_CLASSES),       # decoder_D split: alpha half
        ("dec_b_w",   Z_DIM,    NUM_CLASSES),       # decoder_D split: beta half
        ("cls_b",     1,        NUM_CLASSES),
        ("dec_a_b",   1,        NUM_CLASSES),
        ("dec_b_b",   1,        NUM_CLASSES),
    ]
    layout, row = {}, 0
    for name, nr, nc in blocks:
        assert nc <= SLAB_LANES, (name, nc)
        layout[name] = (row, nr, nc)
        row += -(-nr // 8) * 8          # next block starts on an 8-row boundary
    return layout, row


def init_params(key, in_channels):
    """Builds the single packed (rows, SLAB_LANES) f32 parameter slab.
    Linear inits mimic PyTorch defaults (uniform +/- 1/sqrt(fan_in)); weights
    are stored already transposed to (in, out)."""
    def linear(k, fan_in, fan_out):
        kw, kb = jax.random.split(k)
        bound = 1.0 / float(fan_in) ** 0.5
        w = jax.random.uniform(kw, (fan_in, fan_out), jnp.float32, -bound, bound)
        b = jax.random.uniform(kb, (fan_out,), jnp.float32, -bound, bound)
        return w, b

    ks = jax.random.split(key, 5)
    conv_w, conv_b = linear(ks[0], in_channels, FEAT_DIM)    # stand-in 1x1 conv
    p1_w, p1_b = linear(ks[1], FEAT_DIM, FEAT_DIM)           # proj[0]
    p2_w, p2_b = linear(ks[2], FEAT_DIM, 2 * Z_DIM)          # proj[2]
    dec_w, dec_b = linear(ks[3], Z_DIM, 2 * NUM_CLASSES)     # decoder_D
    cls_w, cls_b = linear(ks[4], Z_DIM, NUM_CLASSES)         # linear_classifier

    layout, rows = _make_layout(in_channels)
    slab = jnp.zeros((rows, SLAB_LANES), jnp.float32)

    def put(s, name, value):
        r0, nr, nc = layout[name]
        assert value.shape == (nr, nc), (name, value.shape, (nr, nc))
        return s.at[r0:r0 + nr, 0:nc].set(value.astype(jnp.float32))

    Z, N = Z_DIM, NUM_CLASSES
    slab = put(slab, "conv", jnp.concatenate([conv_w.T, conv_b[:, None]], axis=1))
    slab = put(slab, "p1_w", p1_w)
    slab = put(slab, "p1_b", p1_b[None, :])
    slab = put(slab, "p2_mu_w", p2_w[:, :Z])
    slab = put(slab, "p2_std_w", p2_w[:, Z:])
    slab = put(slab, "p2_mu_b", p2_b[None, :Z])
    slab = put(slab, "p2_std_b", p2_b[None, Z:])
    slab = put(slab, "cls_w", cls_w)
    slab = put(slab, "dec_a_w", dec_w[:, :N])
    slab = put(slab, "dec_b_w", dec_w[:, N:])
    slab = put(slab, "cls_b", cls_b[None, :])
    slab = put(slab, "dec_a_b", dec_b[None, :N])
    slab = put(slab, "dec_b_b", dec_b[None, N:])
    return slab


# ---------------------------------------------------------------------------
# kernel
# ---------------------------------------------------------------------------
def _multilabel_kernel(layout, B, C, act_ref, slab_ref, out_ref):
    f32 = jnp.float32
    HW = act_ref.shape[1]
    F, Z, N = FEAT_DIM, Z_DIM, NUM_CLASSES

    def blk(name):
        r0, nr, nc = layout[name]
        return slab_ref[r0:r0 + nr, 0:nc]          # static slice of the packed slab

    act = act_ref[...]                              # (B*C + B, HW): x rows | eps rows
    conv = blk("conv")                              # (F, C+1): weights | bias column

    # --- stand-in feature extractor: 1x1 conv + ReLU + AdaptiveAvgPool2d(1) ---
    # TODO(synk): the resnet50 backbone is not reproduced; a 1x1-conv + ReLU +
    # global-average-pool stand-in producing feat_dim features is used instead.
    # C is tiny -> VPU broadcast-FMA over channels instead of a K=4 MXU matmul;
    # pooling is a per-batch XLU lane reduce (no pooling mask / extra operand).
    pooled = []
    for b in range(B):
        r0 = b * C
        acc = conv[:, 0:1] * act[r0:r0 + 1, :]
        for c in range(1, C):
            acc = acc + conv[:, c:c + 1] * act[r0 + c:r0 + c + 1, :]
        y = jnp.maximum(acc + conv[:, C:C + 1], 0.0)           # (F, HW)
        pooled.append(jnp.sum(y, axis=1, keepdims=True))       # (F, 1) lane reduce
    featT = jnp.concatenate(pooled, axis=1) * (1.0 / HW)        # (F, B)

    eps = act[B * C:B * C + B, 0:Z]                             # (B, Z) appended rows

    # --- proj: Linear(F,F) -> ReLU -> Linear(F, 2Z) stored pre-split (mu|std) ---
    # proj[0] contracts the F axis (dim 0) of featT directly, so the pooled block
    # never needs an explicit (F,B)->(B,F) transpose / materialized feat.
    h = jnp.maximum(
        lax.dot_general(featT, blk("p1_w"), (((0,), (0,)), ((), ())),
                        preferred_element_type=f32) + blk("p1_b"), 0.0)  # (B, F)
    z_mu = jnp.dot(h, blk("p2_mu_w"), preferred_element_type=f32) + blk("p2_mu_b")
    z_std = _softplus(jnp.dot(h, blk("p2_std_w"), preferred_element_type=f32)
                      + blk("p2_std_b"))
    z = z_mu + z_std * eps                                      # Normal rsample, (B, Z)

    # --- decoder_D (pre-split alpha|beta halves) and linear_classifier ---
    alpha = _softplus(jnp.dot(z, blk("dec_a_w"), preferred_element_type=f32)
                      + blk("dec_a_b"))
    beta = _softplus(jnp.dot(z, blk("dec_b_w"), preferred_element_type=f32)
                     + blk("dec_b_b"))
    logits = jnp.dot(z, blk("cls_w"), preferred_element_type=f32) + blk("cls_b")

    # --- single fused, lane-dense output store: [out|alpha|beta|z_mu|z_std|pad] ---
    pad = jnp.zeros((B, out_ref.shape[1] - (3 * N + 2 * Z)), f32)
    out_ref[...] = jnp.concatenate([logits, alpha, beta, z_mu, z_std, pad], axis=1)


# ---------------------------------------------------------------------------
# wrapper (fully jitted: pre-glue + pallas_call + post-glue in one XLA program)
# ---------------------------------------------------------------------------
@jax.jit
def multilabel_model_smile_forward(param_slab, x, key):
    B, C, H, W = x.shape
    HW = H * W
    N, Z = NUM_CLASSES, Z_DIM
    assert HW >= Z
    layout, _ = _make_layout(C)

    key_eps, key_beta = jax.random.split(key)
    eps = jax.random.normal(key_eps, (B, Z), jnp.float32)

    # Single per-call activation slab: x as (B*C, HW) rows (channel permute folded
    # into the kernel's row indexing) followed by B eps rows (eps in lanes 0:Z).
    x_rows = x.reshape(B * C, HW).astype(jnp.float32)
    eps_rows = jnp.pad(eps, ((0, 0), (0, HW - Z)))
    act = jnp.concatenate([x_rows, eps_rows], axis=0)           # (B*(C+1), HW)

    vmem = pl.BlockSpec(memory_space=pltpu.MemorySpace.VMEM)
    # TODO(synk): if the stand-in backbone is replaced with real ResNet-scale
    # activations (B*H*W >> VMEM), add a pixel/batch grid marked "parallel" (uses
    # v7x's 2 TensorCores), keep a VMEM pooled-sum accumulator with pl.when
    # init/finalize, size tiles against v7x's 64 MiB VMEM via
    # pltpu.CompilerParams(vmem_limit_bytes=...), and feed big matmuls bf16 inputs.
    fused = pl.pallas_call(
        functools.partial(_multilabel_kernel, layout, B, C),
        out_shape=jax.ShapeDtypeStruct((B, OUT_LANES), jnp.float32),
        in_specs=[vmem, vmem],
        out_specs=vmem,
    )(act, param_slab)

    out = fused[:, 0:N]
    alpha = fused[:, N:2 * N]
    beta = fused[:, 2 * N:3 * N]
    z_mu = fused[:, 3 * N:3 * N + Z]
    z_std = fused[:, 3 * N + Z:3 * N + 2 * Z]

    # TODO(synk): Beta(alpha, beta).rsample() uses gamma rejection sampling with
    # no clean Pallas equivalent; the draw is done with jax.random.beta in glue.
    d = jax.random.beta(key_beta, alpha, beta)

    return out, d, z_mu, z_std, alpha, beta


if __name__ == "__main__":
    key = jax.random.PRNGKey(0)
    k_param, k_x, k_sample = jax.random.split(key, 3)

    B, C, H, W = 2, 4, 16, 16
    x = jax.random.normal(k_x, (B, C, H, W), jnp.float32)
    slab = init_params(k_param, C)

    outputs = multilabel_model_smile_forward(slab, x, k_sample)
    outputs = jax.block_until_ready(outputs)

    out, d, z_mu, z_std, alpha, beta = outputs
    assert out.shape == (B, NUM_CLASSES)
    assert d.shape == (B, NUM_CLASSES)
    assert z_mu.shape == (B, Z_DIM) and z_std.shape == (B, Z_DIM)
    assert alpha.shape == (B, NUM_CLASSES) and beta.shape == (B, NUM_CLASSES)
    assert bool(jnp.all(jnp.isfinite(out)))
    assert bool(jnp.all(z_std > 0)) and bool(jnp.all(alpha > 0)) and bool(jnp.all(beta > 0))
    assert bool(jnp.all((d >= 0) & (d <= 1)))

    print("KERNEL_OK")
</pallas_src>

<mosaic_0001>
module attributes {stable_mosaic.version = 11 : i64} {
  func.func @_multilabel_kernel(%arg0: memref<10x256xf32, #tpu.memory_space<vmem>>, %arg1: memref<224x32xf32, #tpu.memory_space<vmem>>, %arg2: memref<2x128xf32, #tpu.memory_space<vmem>>) attributes {dimension_semantics = [], scalar_prefetch = 0 : i64, scratch_operands = 0 : i64, tpu.core_type = #tpu.core_type<tc>} {
    %c0 = arith.constant 0 : index
    %c0_0 = arith.constant 0 : index
    %0 = vector.load %arg0[%c0, %c0_0] : memref<10x256xf32, #tpu.memory_space<vmem>>, vector<10x256xf32>
    %c0_1 = arith.constant 0 : index
    %c0_2 = arith.constant 0 : index
    %1 = vector.load %arg1[%c0_1, %c0_2] : memref<224x32xf32, #tpu.memory_space<vmem>>, vector<32x5xf32>
    %2 = vector.extract_strided_slice %1 {offsets = [0, 0], sizes = [32, 1], strides = [1, 1]} : vector<32x5xf32> to vector<32x1xf32>
    %3 = vector.extract_strided_slice %0 {offsets = [0, 0], sizes = [1, 256], strides = [1, 1]} : vector<10x256xf32> to vector<1x256xf32>
    %4 = vector.broadcast %2 : vector<32x1xf32> to vector<32x256xf32>
    %5 = vector.broadcast %3 : vector<1x256xf32> to vector<32x256xf32>
    %6 = arith.mulf %4, %5 : vector<32x256xf32>
    %7 = vector.extract_strided_slice %1 {offsets = [0, 1], sizes = [32, 1], strides = [1, 1]} : vector<32x5xf32> to vector<32x1xf32>
    %8 = vector.extract_strided_slice %0 {offsets = [1, 0], sizes = [1, 256], strides = [1, 1]} : vector<10x256xf32> to vector<1x256xf32>
    %9 = vector.broadcast %7 : vector<32x1xf32> to vector<32x256xf32>
    %10 = vector.broadcast %8 : vector<1x256xf32> to vector<32x256xf32>
    %11 = arith.mulf %9, %10 : vector<32x256xf32>
    %12 = arith.addf %6, %11 : vector<32x256xf32>
    %13 = vector.extract_strided_slice %1 {offsets = [0, 2], sizes = [32, 1], strides = [1, 1]} : vector<32x5xf32> to vector<32x1xf32>
    %14 = vector.extract_strided_slice %0 {offsets = [2, 0], sizes = [1, 256], strides = [1, 1]} : vector<10x256xf32> to vector<1x256xf32>
    %15 = vector.broadcast %13 : vector<32x1xf32> to vector<32x256xf32>
    %16 = vector.broadcast %14 : vector<1x256xf32> to vector<32x256xf32>
    %17 = arith.mulf %15, %16 : vector<32x256xf32>
    %18 = arith.addf %12, %17 : vector<32x256xf32>
    %19 = vector.extract_strided_slice %1 {offsets = [0, 3], sizes = [32, 1], strides = [1, 1]} : vector<32x5xf32> to vector<32x1xf32>
    %20 = vector.extract_strided_slice %0 {offsets = [3, 0], sizes = [1, 256], strides = [1, 1]} : vector<10x256xf32> to vector<1x256xf32>
    %21 = vector.broadcast %19 : vector<32x1xf32> to vector<32x256xf32>
    %22 = vector.broadcast %20 : vector<1x256xf32> to vector<32x256xf32>
    %23 = arith.mulf %21, %22 : vector<32x256xf32>
    %24 = arith.addf %18, %23 : vector<32x256xf32>
    %25 = vector.extract_strided_slice %1 {offsets = [0, 4], sizes = [32, 1], strides = [1, 1]} : vector<32x5xf32> to vector<32x1xf32>
    %26 = vector.broadcast %25 : vector<32x1xf32> to vector<32x256xf32>
    %27 = arith.addf %24, %26 : vector<32x256xf32>
    %cst = arith.constant 0.000000e+00 : f32
    %28 = vector.broadcast %cst : f32 to vector<32x256xf32>
    %29 = arith.maximumf %27, %28 : vector<32x256xf32>
    %cst_3 = arith.constant dense<0.000000e+00> : vector<32xf32>
    %30 = vector.multi_reduction <add>, %29, %cst_3 [1] : vector<32x256xf32> to vector<32xf32>
    %31 = vector.shape_cast %30 : vector<32xf32> to vector<32x1xf32>
    %32 = vector.extract_strided_slice %1 {offsets = [0, 0], sizes = [32, 1], strides = [1, 1]} : vector<32x5xf32> to vector<32x1xf32>
    %33 = vector.extract_strided_slice %0 {offsets = [4, 0], sizes = [1, 256], strides = [1, 1]} : vector<10x256xf32> to vector<1x256xf32>
    %34 = vector.broadcast %32 : vector<32x1xf32> to vector<32x256xf32>
    %35 = vector.broadcast %33 : vector<1x256xf32> to vector<32x256xf32>
    %36 = arith.mulf %34, %35 : vector<32x256xf32>
    %37 = vector.extract_strided_slice %1 {offsets = [0, 1], sizes = [32, 1], strides = [1, 1]} : vector<32x5xf32> to vector<32x1xf32>
    %38 = vector.extract_strided_slice %0 {offsets = [5, 0], sizes = [1, 256], strides = [1, 1]} : vector<10x256xf32> to vector<1x256xf32>
    %39 = vector.broadcast %37 : vector<32x1xf32> to vector<32x256xf32>
    %40 = vector.broadcast %38 : vector<1x256xf32> to vector<32x256xf32>
    %41 = arith.mulf %39, %40 : vector<32x256xf32>
    %42 = arith.addf %36, %41 : vector<32x256xf32>
    %43 = vector.extract_strided_slice %1 {offsets = [0, 2], sizes = [32, 1], strides = [1, 1]} : vector<32x5xf32> to vector<32x1xf32>
    %44 = vector.extract_strided_slice %0 {offsets = [6, 0], sizes = [1, 256], strides = [1, 1]} : vector<10x256xf32> to vector<1x256xf32>
    %45 = vector.broadcast %43 : vector<32x1xf32> to vector<32x256xf32>
    %46 = vector.broadcast %44 : vector<1x256xf32> to vector<32x256xf32>
    %47 = arith.mulf %45, %46 : vector<32x256xf32>
    %48 = arith.addf %42, %47 : vector<32x256xf32>
    %49 = vector.extract_strided_slice %1 {offsets = [0, 3], sizes = [32, 1], strides = [1, 1]} : vector<32x5xf32> to vector<32x1xf32>
    %50 = vector.extract_strided_slice %0 {offsets = [7, 0], sizes = [1, 256], strides = [1, 1]} : vector<10x256xf32> to vector<1x256xf32>
    %51 = vector.broadcast %49 : vector<32x1xf32> to vector<32x256xf32>
    %52 = vector.broadcast %50 : vector<1x256xf32> to vector<32x256xf32>
    %53 = arith.mulf %51, %52 : vector<32x256xf32>
    %54 = arith.addf %48, %53 : vector<32x256xf32>
    %55 = vector.extract_strided_slice %1 {offsets = [0, 4], sizes = [32, 1], strides = [1, 1]} : vector<32x5xf32> to vector<32x1xf32>
    %56 = vector.broadcast %55 : vector<32x1xf32> to vector<32x256xf32>
    %57 = arith.addf %54, %56 : vector<32x256xf32>
    %cst_4 = arith.constant 0.000000e+00 : f32
    %58 = vector.broadcast %cst_4 : f32 to vector<32x256xf32>
    %59 = arith.maximumf %57, %58 : vector<32x256xf32>
    %cst_5 = arith.constant dense<0.000000e+00> : vector<32xf32>
    %60 = vector.multi_reduction <add>, %59, %cst_5 [1] : vector<32x256xf32> to vector<32xf32>
    %61 = vector.shape_cast %60 : vector<32xf32> to vector<32x1xf32>
    %62 = tpu.concatenate %31, %61 in 1 : vector<32x1xf32>, vector<32x1xf32> -> vector<32x2xf32>
    %cst_6 = arith.constant 3.906250e-03 : f32
    %63 = vector.broadcast %cst_6 : f32 to vector<32x2xf32>
    %64 = arith.mulf %62, %63 : vector<32x2xf32>
    %65 = vector.extract_strided_slice %0 {offsets = [8, 0], sizes = [2, 16], strides = [1, 1]} : vector<10x256xf32> to vector<2x16xf32>
    %c32 = arith.constant 32 : index
    %c0_7 = arith.constant 0 : index
    %66 = vector.load %arg1[%c32, %c0_7] : memref<224x32xf32, #tpu.memory_space<vmem>>, vector<32x32xf32>
    %cst_8 = arith.constant dense<0.000000e+00> : vector<2x32xf32>
    %67 = tpu.matmul %64, %66, %cst_8 {dimension_numbers = #tpu.dot_dimension_numbers<[0], [0], [1], [1], [0, 1, 1, 1], [], []>} : vector<32x2xf32>, vector<32x32xf32>, vector<2x32xf32> -> vector<2x32xf32>
    %c64 = arith.constant 64 : index
    %c0_9 = arith.constant 0 : index
    %68 = vector.load %arg1[%c64, %c0_9] : memref<224x32xf32, #tpu.memory_space<vmem>>, vector<1x32xf32>
    %69 = vector.broadcast %68 : vector<1x32xf32> to vector<2x32xf32>
    %70 = arith.addf %67, %69 : vector<2x32xf32>
    %cst_10 = arith.constant 0.000000e+00 : f32
    %71 = vector.broadcast %cst_10 : f32 to vector<2x32xf32>
    %72 = arith.maximumf %70, %71 : vector<2x32xf32>
    %c72 = arith.constant 72 : index
    %c0_11 = arith.constant 0 : index
    %73 = vector.load %arg1[%c72, %c0_11] : memref<224x32xf32, #tpu.memory_space<vmem>>, vector<32x16xf32>
    %cst_12 = arith.constant dense<0.000000e+00> : vector<2x16xf32>
    %74 = tpu.matmul %72, %73, %cst_12 {dimension_numbers = #tpu.dot_dimension_numbers<[1], [0], [0], [1], [0, 0, 1, 1], [], []>} : vector<2x32xf32>, vector<32x16xf32>, vector<2x16xf32> -> vector<2x16xf32>
    %c136 = arith.constant 136 : index
    %c0_13 = arith.constant 0 : index
    %75 = vector.load %arg1[%c136, %c0_13] : memref<224x32xf32, #tpu.memory_space<vmem>>, vector<1x16xf32>
    %76 = vector.broadcast %75 : vector<1x16xf32> to vector<2x16xf32>
    %77 = arith.addf %74, %76 : vector<2x16xf32>
    %c104 = arith.constant 104 : index
    %c0_14 = arith.constant 0 : index
    %78 = vector.load %arg1[%c104, %c0_14] : memref<224x32xf32, #tpu.memory_space<vmem>>, vector<32x16xf32>
    %cst_15 = arith.constant dense<0.000000e+00> : vector<2x16xf32>
    %79 = tpu.matmul %72, %78, %cst_15 {dimension_numbers = #tpu.dot_dimension_numbers<[1], [0], [0], [1], [0, 0, 1, 1], [], []>} : vector<2x32xf32>, vector<32x16xf32>, vector<2x16xf32> -> vector<2x16xf32>
    %c144 = arith.constant 144 : index
    %c0_16 = arith.constant 0 : index
    %80 = vector.load %arg1[%c144, %c0_16] : memref<224x32xf32, #tpu.memory_space<vmem>>, vector<1x16xf32>
    %81 = vector.broadcast %80 : vector<1x16xf32> to vector<2x16xf32>
    %82 = arith.addf %79, %81 : vector<2x16xf32>
    %83 = math.absf %82 : vector<2x16xf32>
    %cst_17 = arith.constant 0.000000e+00 : f32
    %84 = vector.broadcast %cst_17 : f32 to vector<2x16xf32>
    %85 = arith.subf %84, %83 : vector<2x16xf32>
    %86 = math.exp %85 : vector<2x16xf32>
    %cst_18 = arith.constant 2.000000e+01 : f32
    %87 = vector.broadcast %cst_18 : f32 to vector<2x16xf32>
    %88 = arith.cmpf ogt, %82, %87 : vector<2x16xf32>
    %cst_19 = arith.constant 0.000000e+00 : f32
    %89 = vector.broadcast %cst_19 : f32 to vector<2x16xf32>
    %90 = arith.maximumf %82, %89 : vector<2x16xf32>
    %cst_20 = arith.constant 1.000000e+00 : f32
    %91 = vector.broadcast %cst_20 : f32 to vector<2x16xf32>
    %92 = arith.addf %91, %86 : vector<2x16xf32>
    %cst_21 = arith.constant 1.000000e+00 : f32
    %93 = vector.broadcast %cst_21 : f32 to vector<2x16xf32>
    %94 = arith.cmpf oeq, %92, %93 : vector<2x16xf32>
    %cst_22 = arith.constant 1.000000e+00 : f32
    %95 = vector.broadcast %cst_22 : f32 to vector<2x16xf32>
    %96 = arith.subf %92, %95 : vector<2x16xf32>
    %cst_23 = arith.constant 1.000000e+00 : f32
    %97 = vector.broadcast %cst_23 : f32 to vector<2x16xf32>
    %98 = arith.select %94, %97, %96 : vector<2x16xi1>, vector<2x16xf32>
    %cst_24 = arith.constant 1.000000e+00 : f32
    %99 = vector.broadcast %cst_24 : f32 to vector<2x16xf32>
    %100 = arith.cmpf oeq, %92, %99 : vector<2x16xf32>
    %101 = math.log %92 : vector<2x16xf32>
    %102 = arith.divf %86, %98 : vector<2x16xf32>
    %103 = arith.mulf %101, %102 : vector<2x16xf32>
    %104 = arith.select %100, %86, %103 : vector<2x16xi1>, vector<2x16xf32>
    %105 = arith.addf %90, %104 : vector<2x16xf32>
    %106 = arith.select %88, %82, %105 : vector<2x16xi1>, vector<2x16xf32>
    %107 = arith.mulf %106, %65 : vector<2x16xf32>
    %108 = arith.addf %77, %107 : vector<2x16xf32>
    %c168 = arith.constant 168 : index
    %c0_25 = arith.constant 0 : index
    %109 = vector.load %arg1[%c168, %c0_25] : memref<224x32xf32, #tpu.memory_space<vmem>>, vector<16x8xf32>
    %cst_26 = arith.constant dense<0.000000e+00> : vector<2x8xf32>
    %110 = tpu.matmul %108, %109, %cst_26 {dimension_numbers = #tpu.dot_dimension_numbers<[1], [0], [0], [1], [0, 0, 1, 1], [], []>} : vector<2x16xf32>, vector<16x8xf32>, vector<2x8xf32> -> vector<2x8xf32>
    %c208 = arith.constant 208 : index
    %c0_27 = arith.constant 0 : index
    %111 = vector.load %arg1[%c208, %c0_27] : memref<224x32xf32, #tpu.memory_space<vmem>>, vector<1x8xf32>
    %112 = vector.broadcast %111 : vector<1x8xf32> to vector<2x8xf32>
    %113 = arith.addf %110, %112 : vector<2x8xf32>
    %114 = math.absf %113 : vector<2x8xf32>
    %cst_28 = arith.constant 0.000000e+00 : f32
    %115 = vector.broadcast %cst_28 : f32 to vector<2x8xf32>
    %116 = arith.subf %115, %114 : vector<2x8xf32>
    %117 = math.exp %116 : vector<2x8xf32>
    %cst_29 = arith.constant 2.000000e+01 : f32
    %118 = vector.broadcast %cst_29 : f32 to vector<2x8xf32>
    %119 = arith.cmpf ogt, %113, %118 : vector<2x8xf32>
    %cst_30 = arith.constant 0.000000e+00 : f32
    %120 = vector.broadcast %cst_30 : f32 to vector<2x8xf32>
    %121 = arith.maximumf %113, %120 : vector<2x8xf32>
    %cst_31 = arith.constant 1.000000e+00 : f32
    %122 = vector.broadcast %cst_31 : f32 to vector<2x8xf32>
    %123 = arith.addf %122, %117 : vector<2x8xf32>
    %cst_32 = arith.constant 1.000000e+00 : f32
    %124 = vector.broadcast %cst_32 : f32 to vector<2x8xf32>
    %125 = arith.cmpf oeq, %123, %124 : vector<2x8xf32>
    %cst_33 = arith.constant 1.000000e+00 : f32
    %126 = vector.broadcast %cst_33 : f32 to vector<2x8xf32>
    %127 = arith.subf %123, %126 : vector<2x8xf32>
    %cst_34 = arith.constant 1.000000e+00 : f32
    %128 = vector.broadcast %cst_34 : f32 to vector<2x8xf32>
    %129 = arith.select %125, %128, %127 : vector<2x8xi1>, vector<2x8xf32>
    %cst_35 = arith.constant 1.000000e+00 : f32
    %130 = vector.broadcast %cst_35 : f32 to vector<2x8xf32>
    %131 = arith.cmpf oeq, %123, %130 : vector<2x8xf32>
    %132 = math.log %123 : vector<2x8xf32>
    %133 = arith.divf %117, %129 : vector<2x8xf32>
    %134 = arith.mulf %132, %133 : vector<2x8xf32>
    %135 = arith.select %131, %117, %134 : vector<2x8xi1>, vector<2x8xf32>
    %136 = arith.addf %121, %135 : vector<2x8xf32>
    %137 = arith.select %119, %113, %136 : vector<2x8xi1>, vector<2x8xf32>
    %c184 = arith.constant 184 : index
    %c0_36 = arith.constant 0 : index
    %138 = vector.load %arg1[%c184, %c0_36] : memref<224x32xf32, #tpu.memory_space<vmem>>, vector<16x8xf32>
    %cst_37 = arith.constant dense<0.000000e+00> : vector<2x8xf32>
    %139 = tpu.matmul %108, %138, %cst_37 {dimension_numbers = #tpu.dot_dimension_numbers<[1], [0], [0], [1], [0, 0, 1, 1], [], []>} : vector<2x16xf32>, vector<16x8xf32>, vector<2x8xf32> -> vector<2x8xf32>
    %c216 = arith.constant 216 : index
    %c0_38 = arith.constant 0 : index
    %140 = vector.load %arg1[%c216, %c0_38] : memref<224x32xf32, #tpu.memory_space<vmem>>, vector<1x8xf32>
    %141 = vector.broadcast %140 : vector<1x8xf32> to vector<2x8xf32>
    %142 = arith.addf %139, %141 : vector<2x8xf32>
    %143 = math.absf %142 : vector<2x8xf32>
    %cst_39 = arith.constant 0.000000e+00 : f32
    %144 = vector.broadcast %cst_39 : f32 to vector<2x8xf32>
    %145 = arith.subf %144, %143 : vector<2x8xf32>
    %146 = math.exp %145 : vector<2x8xf32>
    %cst_40 = arith.constant 2.000000e+01 : f32
    %147 = vector.broadcast %cst_40 : f32 to vector<2x8xf32>
    %148 = arith.cmpf ogt, %142, %147 : vector<2x8xf32>
    %cst_41 = arith.constant 0.000000e+00 : f32
    %149 = vector.broadcast %cst_41 : f32 to vector<2x8xf32>
    %150 = arith.maximumf %142, %149 : vector<2x8xf32>
    %cst_42 = arith.constant 1.000000e+00 : f32
    %151 = vector.broadcast %cst_42 : f32 to vector<2x8xf32>
    %152 = arith.addf %151, %146 : vector<2x8xf32>
    %cst_43 = arith.constant 1.000000e+00 : f32
    %153 = vector.broadcast %cst_43 : f32 to vector<2x8xf32>
    %154 = arith.cmpf oeq, %152, %153 : vector<2x8xf32>
    %cst_44 = arith.constant 1.000000e+00 : f32
    %155 = vector.broadcast %cst_44 : f32 to vector<2x8xf32>
    %156 = arith.subf %152, %155 : vector<2x8xf32>
    %cst_45 = arith.constant 1.000000e+00 : f32
    %157 = vector.broadcast %cst_45 : f32 to vector<2x8xf32>
    %158 = arith.select %154, %157, %156 : vector<2x8xi1>, vector<2x8xf32>
    %cst_46 = arith.constant 1.000000e+00 : f32
    %159 = vector.broadcast %cst_46 : f32 to vector<2x8xf32>
    %160 = arith.cmpf oeq, %152, %159 : vector<2x8xf32>
    %161 = math.log %152 : vector<2x8xf32>
    %162 = arith.divf %146, %158 : vector<2x8xf32>
    %163 = arith.mulf %161, %162 : vector<2x8xf32>
    %164 = arith.select %160, %146, %163 : vector<2x8xi1>, vector<2x8xf32>
    %165 = arith.addf %150, %164 : vector<2x8xf32>
    %166 = arith.select %148, %142, %165 : vector<2x8xi1>, vector<2x8xf32>
    %c152 = arith.constant 152 : index
    %c0_47 = arith.constant 0 : index
    %167 = vector.load %arg1[%c152, %c0_47] : memref<224x32xf32, #tpu.memory_space<vmem>>, vector<16x8xf32>
    %cst_48 = arith.constant dense<0.000000e+00> : vector<2x8xf32>
    %168 = tpu.matmul %108, %167, %cst_48 {dimension_numbers = #tpu.dot_dimension_numbers<[1], [0], [0], [1], [0, 0, 1, 1], [], []>} : vector<2x16xf32>, vector<16x8xf32>, vector<2x8xf32> -> vector<2x8xf32>
    %c200 = arith.constant 200 : index
    %c0_49 = arith.constant 0 : index
    %169 = vector.load %arg1[%c200, %c0_49] : memref<224x32xf32, #tpu.memory_space<vmem>>, vector<1x8xf32>
    %170 = vector.broadcast %169 : vector<1x8xf32> to vector<2x8xf32>
    %171 = arith.addf %168, %170 : vector<2x8xf32>
    %cst_50 = arith.constant 0.000000e+00 : f32
    %172 = vector.broadcast %cst_50 : f32 to vector<2x72xf32>
    %173 = tpu.concatenate %171, %137, %166, %77, %106, %172 in 1 : vector<2x8xf32>, vector<2x8xf32>, vector<2x8xf32>, vector<2x16xf32>, vector<2x16xf32>, vector<2x72xf32> -> vector<2x128xf32>
    %c0_51 = arith.constant 0 : index
    %c0_52 = arith.constant 0 : index
    %174 = vector.load %arg2[%c0_51, %c0_52] : memref<2x128xf32, #tpu.memory_space<vmem>>, vector<2x128xf32>
    tpu.vector_store %arg2[%c0_51, %c0_52], %173 {strides = array<i32>} : memref<2x128xf32, #tpu.memory_space<vmem>>, vector<2x128xf32>,
    return
  }
}

</mosaic_0001>

<bundles_post_ra>
// kernel: multilabel_model_smile_forward.1
= control target key start
LH: loop header
LB: loop body
LE: loop exit
PB: predicated region body
PF: predicated region fallthrough
CT: control target
= control target key end

     0   :  { %v1108_v0 = vmov 1   ;;  %v1109_v1 = vmov 0   ;;  %v1110_v5 = vmov 2   ;;  %v1111_v6 = vmov 3   ;;  %s1116_s3 = smov 24   ;;  %s1117_s13 = smov 8   ;;  %s1400_s1 = inlined_call_operand.vmem [shape: f32[224,32], index: 1, kind: input, shape index: {}]   ;;  %s1401_s0 = inlined_call_operand.vmem [shape: f32[10,256], index: 0, kind: input, shape index: {}]   ;;  %s1402_s2 = inlined_call_operand.vmem [shape: f32[2,128], index: 2, kind: output, shape index: {}]  }
   0x1   :  { %1073 = vset.pattern.permute.xlu0 %v1108_v0  ;;  %1075 = vset.pattern.permute.xlu1 %v1109_v1  ;;  %v15_v2 = vld [vmem:[%s1400_s1 + $0x8] sm:$0xff]  ;;  %v14_v3 = vld [vmem:[%s1400_s1] sm:$0xff]  ;;  %v16_v4 = vld [vmem:[%s1400_s1 + $0x10] sm:$0xff]  ;;  %v1112_v8 = vmov 4   ;;  %v38_v12 = vlaneseq  ;;  %vm1114_vm0 = vmmov 0   ;;  %vm334_vm1 = vcmask 7168  }
   0x2   :  { %25 = vperm.xlu1 %1075, %v15_v2   ;;  %55 = vperm.xlu0 %1073, %v14_v3   ;;  %v17_v7 = vld [vmem:[%s1400_s1 + $0x18] sm:$0xff]  ;;  %v11_v21 = vld [vmem:[%s1401_s0] sm:$0xff]  ;;  %v12_v22 = vld [vmem:[%s1401_s0 + $0x8] sm:$0xff]  ;;  %vm384_vm2 = vcmask 261120   ;;  %vm647_vm5 = vcmask 130048   ;;  %s1118_s14 = smov 16  }
   0x3   :  { %v39_v14 = vshrl.u32 %v38_v12, 7  ;;  %s1119_s15 = smov 40   ;;  %vm927_vm10 = vcmask 64512   ;;  %vm930_vm11 = vcmask 195584   ;;  %vm932_vm12 = vcmask 326656  }
   0x4   :  { %vm934_vm13 = vcmask 457728  }
   0x5   :  { %v40_v17 = vsub.s32 0, %v39_v14  ;;  %v72_v18 = vsub.s32 1, %v39_v14  ;;  %v236_v19 = vsub.s32 5, %v39_v14  ;;  %v220_v20 = vsub.s32 4, %v39_v14 }
   0x6   :  { %1076 = vset.pattern.permute.xlu1 %v1108_v0  ;;  %1074 = vset.pattern.permute.xlu0 %v1109_v1  ;;  %v112_v23 = vsub.s32 2, %v39_v14  ;;  %v260_v24 = vsub.s32 6, %v39_v14  ;;  %v152_v26 = vsub.s32 3, %v39_v14  ;;  %v284_v27 = vsub.s32 7, %v39_v14 }
   0x7   :  { %59 = vperm.xlu1 %1076, %v15_v2   ;;  %20 = vperm.xlu0 %1074, %v14_v3   ;;  %v1157_v28 = vrot.slane %v11_v21, %v40_v17  ;;  %v1159_v29 = vrot.slane %v11_v21, %v72_v18  ;;  %v1161_v30 = vrot.slane %v12_v22, %v72_v18 }
   0x8   :  { %v1163_v31 = vrot.slane %v11_v21, %v236_v19  ;;  %v1167_v33 = vrot.slane %v12_v22, %v40_v17  ;;  %v1169_v34 = vrot.slane %v11_v21, %v220_v20  ;;  %v1171_v35 = vrot.slane %v12_v22, %v220_v20 }
   0x9   :  { %v1173_v36 = vrot.slane %v12_v22, %v236_v19  ;;  %v1175_v37 = vrot.slane %v11_v21, %v112_v23  ;;  %v1177_v38 = vrot.slane %v12_v22, %v112_v23  ;;  %v1179_v39 = vrot.slane %v11_v21, %v260_v24 }
   0xa   :  { %v1181_v40 = vrot.slane %v12_v22, %v260_v24  ;;  %v1183_v41 = vrot.slane %v11_v21, %v152_v26  ;;  %v1185_v42 = vrot.slane %v12_v22, %v152_v26  ;;  %v1187_v43 = vrot.slane %v11_v21, %v284_v27 }
   0xb   :  { %1077 = vset.pattern.permute.xlu1 %v1110_v5  ;;  %30 = vperm.xlu0 %1074, %v16_v4   ;;  %v1206_v61 = vrot.slane %v12_v22, %v284_v27 }
   0xc   :  { %95 = vperm.xlu1 %1077, %v14_v3  }
   0xf   :  { %1082 = vset.pattern.permute.xlu0 %v1110_v5 }
  0x10   :  { %1078 = vset.pattern.permute.xlu1 %v1108_v0  ;;  %103 = vperm.xlu0 %1082, %v16_v4  }
  0x11   :  { %63 = vperm.xlu1 %1078, %v16_v4  }
  0x14   :  { %1083 = vset.pattern.permute.xlu0 %v1111_v6 }
  0x15   :  { %1079 = vset.pattern.permute.xlu1 %v1110_v5  ;;  %135 = vperm.xlu0 %1083, %v14_v3  }
  0x16   :  { %99 = vperm.xlu1 %1079, %v15_v2  }
  0x19   :  { %143 = vperm.xlu0 %1083, %v16_v4  }
  0x1a   :  { %1080 = vset.pattern.permute.xlu1 %v1109_v1 }
  0x1b   :  { %35 = vperm.xlu1 %1080, %v17_v7  }
  0x1d   :  { %1088 = vset.pattern.permute.xlu0 %v1112_v8 }
  0x1e   :  { %179 = vperm.xlu0 %1088, %v15_v2  }
  0x1f   :  { %1081 = vset.pattern.permute.xlu1 %v1108_v0 }
  0x20   :  { %67 = vperm.xlu1 %1081, %v17_v7  }
  0x24   :  { %1084 = vset.pattern.permute.xlu1 %v1111_v6 }
  0x25   :  { %139 = vperm.xlu1 %1084, %v15_v2  }
  0x29   :  { %1085 = vset.pattern.permute.xlu1 %v1110_v5 }
  0x2a   :  { %107 = vperm.xlu1 %1085, %v17_v7  }
  0x2e   :  { %1086 = vset.pattern.permute.xlu1 %v1112_v8 }
  0x2f   :  { %175 = vperm.xlu1 %1086, %v14_v3  }
  0x33   :  { %1087 = vset.pattern.permute.xlu1 %v1111_v6 }
  0x34   :  { %147 = vperm.xlu1 %1087, %v17_v7  }
  0x38   :  { %1089 = vset.pattern.permute.xlu1 %v1112_v8 }
  0x39   :  { %183 = vperm.xlu1 %1089, %v16_v4  }
  0x3d   :  { %187 = vperm.xlu1 %1089, %v17_v7  }
  0x81   :  { %v26_v9 = vpop.permute.xlu1 %25  ;;  %v56_v11 = vpop.permute.xlu0 %55 }
  0x82   :  { %v48_v44 = vmul.f32 %v1157_v28, %v26_v9  ;;  %v49_v48 = vmul.f32 %v1167_v33, %v26_v9  ;;  %v228_v49 = vmul.f32 %v1169_v34, %v26_v9  ;;  %v78_v50 = vmul.f32 %v1159_v29, %v56_v11 }
  0x83   :  { %v79_v54 = vmul.f32 %v1161_v30, %v56_v11  ;;  %v242_v55 = vmul.f32 %v1163_v31, %v56_v11  ;;  %v229_v58 = vmul.f32 %v1171_v35, %v26_v9  ;;  %v243_v59 = vmul.f32 %v1173_v36, %v56_v11 }
  0x86   :  { %v60_v10 = vpop.permute.xlu1 %59  ;;  %v21_v15 = vpop.permute.xlu0 %20 }
  0x87   :  { %v80_v45 = vmul.f32 %v1159_v29, %v60_v10  ;;  %v81_v46 = vmul.f32 %v1161_v30, %v60_v10  ;;  %v244_v47 = vmul.f32 %v1163_v31, %v60_v10  ;;  %v46_v51 = vmul.f32 %v1157_v28, %v21_v15 }
  0x88   :  { %v47_v56 = vmul.f32 %v1167_v33, %v21_v15  ;;  %v226_v57 = vmul.f32 %v1169_v34, %v21_v15  ;;  %v245_v60 = vmul.f32 %v1173_v36, %v60_v10  ;;  %v227_v1 = vmul.f32 %v1171_v35, %v21_v15 }
  0x89   :  { %v88_v62 = vadd.f32 %v80_v45, %v48_v44  ;;  %v89_v63 = vadd.f32 %v81_v46, %v49_v48  ;;  %v252_v0 = vadd.f32 %v244_v47, %v228_v49  ;;  %v86_v2 = vadd.f32 %v78_v50, %v46_v51 }
  0x8a   :  { %v31_v25 = vpop.permute.xlu0 %30  ;;  %v87_v6 = vadd.f32 %v79_v54, %v47_v56  ;;  %v250_v7 = vadd.f32 %v242_v55, %v226_v57  ;;  %v253_v18 = vadd.f32 %v245_v60, %v229_v58  ;;  %v251_v19 = vadd.f32 %v243_v59, %v227_v1 }
  0x8b   :  { %v1147_v13 = vpop.permute.xlu1 %95  ;;  %v50_v4 = vmul.f32 %v1157_v28, %v31_v25  ;;  %v51_v11 = vmul.f32 %v1167_v33, %v31_v25  ;;  %v230_v12 = vmul.f32 %v1169_v34, %v31_v25  ;;  %v231_v20 = vmul.f32 %v1171_v35, %v31_v25 }
  0x8c   :  { %v118_v3 = vmul.f32 %v1175_v37, %v1147_v13  ;;  %v119_v8 = vmul.f32 %v1177_v38, %v1147_v13  ;;  %v266_v9 = vmul.f32 %v1179_v39, %v1147_v13  ;;  %v267_v23 = vmul.f32 %v1181_v40, %v1147_v13 }
  0x8e   :  { %v126_v22 = vadd.f32 %v118_v3, %v86_v2  ;;  %v127_v27 = vadd.f32 %v119_v8, %v87_v6  ;;  %v274_v44 = vadd.f32 %v266_v9, %v250_v7  ;;  %v275_v55 = vadd.f32 %v267_v23, %v251_v19 }
  0x8f   :  { %v104_v52 = vpop.permute.xlu0 %103 }
  0x90   :  { %v1149_v16 = vpop.permute.xlu1 %63  ;;  %v122_v26 = vmul.f32 %v1175_v37, %v104_v52  ;;  %v123_v45 = vmul.f32 %v1177_v38, %v104_v52  ;;  %v270_v46 = vmul.f32 %v1179_v39, %v104_v52  ;;  %v271_v13 = vmul.f32 %v1181_v40, %v104_v52 }
  0x91   :  { %v82_v5 = vmul.f32 %v1159_v29, %v1149_v16  ;;  %v83_v14 = vmul.f32 %v1161_v30, %v1149_v16  ;;  %v246_v15 = vmul.f32 %v1163_v31, %v1149_v16  ;;  %v247_v21 = vmul.f32 %v1173_v36, %v1149_v16 }
  0x93   :  { %v90_v24 = vadd.f32 %v82_v5, %v50_v4  ;;  %v91_v47 = vadd.f32 %v83_v14, %v51_v11  ;;  %v254_v48 = vadd.f32 %v246_v15, %v230_v12  ;;  %v255_v50 = vadd.f32 %v247_v21, %v231_v20 }
  0x94   :  { %v136_v17 = vpop.permute.xlu0 %135 }
  0x95   :  { %v1165_v32 = vpop.permute.xlu1 %99  ;;  %v290_v51 = vmul.f32 %v1187_v43, %v136_v17  ;;  %v291_v54 = vmul.f32 %v1206_v61, %v136_v17  ;;  %v130_v56 = vadd.f32 %v122_v26, %v90_v24  ;;  %v158_v60 = vmul.f32 %v1183_v41, %v136_v17 }
  0x96   :  { %v120_v25 = vmul.f32 %v1175_v37, %v1165_v32  ;;  %v121_v16 = vmul.f32 %v1177_v38, %v1165_v32  ;;  %v159_v1 = vmul.f32 %v1185_v42, %v136_v17  ;;  %v268_v2 = vmul.f32 %v1179_v39, %v1165_v32 }
  0x97   :  { %v269_v52 = vmul.f32 %v1181_v40, %v1165_v32  ;;  %v131_v3 = vadd.f32 %v123_v45, %v91_v47  ;;  %v278_v4 = vadd.f32 %v270_v46, %v254_v48  ;;  %v1249_v7 = vadd.f32 %v271_v13, %v255_v50 }
  0x98   :  { %v144_v57 = vpop.permute.xlu0 %143  ;;  %v128_v5 = vadd.f32 %v120_v25, %v88_v62  ;;  %v129_v6 = vadd.f32 %v121_v16, %v89_v63  ;;  %v298_v11 = vadd.f32 %v290_v51, %v274_v44  ;;  %v299_v12 = vadd.f32 %v291_v54, %v275_v55 }
  0x99   :  { %v162_v8 = vmul.f32 %v1183_v41, %v144_v57  ;;  %v276_v20 = vadd.f32 %v268_v2, %v252_v0  ;;  %v277_v21 = vadd.f32 %v269_v52, %v253_v18  ;;  %v166_v23 = vadd.f32 %v158_v60, %v126_v22 }
  0x9a   :  { %v1197_v53 = vpop.permute.xlu1 %35  ;;  %v167_v24 = vadd.f32 %v159_v1, %v127_v27  ;;  %v163_v62 = vmul.f32 %v1185_v42, %v144_v57  ;;  %v294_v63 = vmul.f32 %v1187_v43, %v144_v57  ;;  %v295_v26 = vmul.f32 %v1206_v61, %v144_v57 }
  0x9b   :  { %v52_v44 = vmul.f32 %v1157_v28, %v1197_v53  ;;  %v53_v45 = vmul.f32 %v1167_v33, %v1197_v53  ;;  %v232_v46 = vmul.f32 %v1169_v34, %v1197_v53  ;;  %v233_v0 = vmul.f32 %v1171_v35, %v1197_v53 }
  0x9c   :  { %v170_v18 = vadd.f32 %v162_v8, %v130_v56  ;;  %v171_v35 = vadd.f32 %v163_v62, %v131_v3 }
  0x9d   :  { %v180_v32 = vpop.permute.xlu0 %179 }
  0x9f   :  { %v1218_v10 = vpop.permute.xlu1 %67 }
  0xa0   :  { %v84_v28 = vmul.f32 %v1159_v29, %v1218_v10  ;;  %v85_v33 = vmul.f32 %v1161_v30, %v1218_v10  ;;  %v248_v34 = vmul.f32 %v1163_v31, %v1218_v10  ;;  %v249_v56 = vmul.f32 %v1173_v36, %v1218_v10 }
  0xa2   :  { %v92_v52 = vadd.f32 %v84_v28, %v52_v44  ;;  %v256_v8 = vadd.f32 %v248_v34, %v232_v46  ;;  %v343_v28 = vld [vmem:[%s1400_s1 + $0x20] sm:$0xff]  ;;  %v345_v34 = vld [vmem:[%s1400_s1 + $0x30] sm:$0xff] }
  0xa4   :  { %v140_v49 = vpop.permute.xlu1 %139 }
  0xa5   :  { %v160_v58 = vmul.f32 %v1183_v41, %v140_v49  ;;  %v161_v59 = vmul.f32 %v1185_v42, %v140_v49  ;;  %v292_v14 = vmul.f32 %v1187_v43, %v140_v49  ;;  %v293_v15 = vmul.f32 %v1206_v61, %v140_v49 }
  0xa7   :  { %v168_v17 = vadd.f32 %v160_v58, %v128_v5  ;;  %v169_v19 = vadd.f32 %v161_v59, %v129_v6  ;;  %v300_v48 = vadd.f32 %v292_v14, %v276_v20  ;;  %v301_v25 = vadd.f32 %v293_v15, %v277_v21 }
  0xa8   :  { %v302_v5 = vadd.f32 %v294_v63, %v278_v4  ;;  %v93_v6 = vadd.f32 %v85_v33, %v53_v45  ;;  %v257_v14 = vadd.f32 %v249_v56, %v233_v0  ;;  %v344_v33 = vld [vmem:[%s1400_s1 + $0x28] sm:$0xff] }
  0xa9   :  { %v108_v9 = vpop.permute.xlu1 %107  ;;  %v192_v27 = vadd.f32 %v180_v32, %v168_v17  ;;  %v193_v47 = vadd.f32 %v180_v32, %v169_v19  ;;  %v308_v58 = vadd.f32 %v300_v48, %v180_v32  ;;  %v309_v59 = vadd.f32 %v301_v25, %v180_v32 }
  0xaa   :  { %v124_v57 = vmul.f32 %v1175_v37, %v108_v9  ;;  %v125_v31 = vmul.f32 %v1177_v38, %v108_v9  ;;  %v272_v3 = vmul.f32 %v1179_v39, %v108_v9  ;;  %v303_v38 = vadd.f32 %v295_v26, %v1249_v7 }
  0xab   :  { %v200_v2 = vmax.f32 %v192_v27, 0.0  ;;  %v201_v30 = vmax.f32 %v193_v47, 0.0  ;;  %v316_v10 = vmax.f32 %v308_v58, 0.0 }
  0xac   :  { %v132_v15 = vadd.f32 %v124_v57, %v92_v52  ;;  %v133_v19 = vadd.f32 %v125_v31, %v93_v6  ;;  %v280_v39 = vadd.f32 %v272_v3, %v256_v8 }
  0xad   :  { %v209_v17 = vadd.f32 %v201_v30, %v200_v2  ;;  %v459_v2 = vld [vmem:[%s1400_s1 + $0x48] sm:$0xff]  ;;  %v460_v30 = vld [vmem:[%s1400_s1 + $0x50] sm:$0xff] }
  0xae   :  { %v176_v22 = vpop.permute.xlu1 %175  ;;  %v1041_v3 = vpack.c.bf16 %v460_v30, %v459_v2  ;;  %v948_v2 = vld [vmem:[%s1400_s1 + $0xd0] ss:$0 sm:$0xff] }
  0xaf   :  { %v306_v16 = vadd.f32 %v298_v11, %v176_v22  ;;  %v307_v49 = vadd.f32 %v299_v12, %v176_v22  ;;  %v190_v50 = vadd.f32 %v176_v22, %v166_v23  ;;  %v191_v13 = vadd.f32 %v176_v22, %v167_v24 }
  0xb0   :  { %v273_v11 = vmul.f32 %v1181_v40, %v108_v9  ;;  %v317_v12 = vmax.f32 %v309_v59, 0.0 }
  0xb1   :  { %v314_v53 = vmax.f32 %v306_v16, 0.0  ;;  %v315_v51 = vmax.f32 %v307_v49, 0.0  ;;  %v198_v54 = vmax.f32 %v190_v50, 0.0  ;;  %v199_v55 = vmax.f32 %v191_v13, 0.0 }
  0xb2   :  { %v325_v23 = vadd.f32 %v317_v12, %v316_v10  ;;  %v541_v12 = vld [vmem:[%s1400_s1 + $0x68] sm:$0xff] }
  0xb3   :  { %v148_v60 = vpop.permute.xlu1 %147  ;;  %v322_v29 = vadd.f32 %v315_v51, %v314_v53  ;;  %v206_v1 = vadd.f32 %v199_v55, %v198_v54  ;;  %v1035_v53 = vpack.c.bf16 %v344_v33, %v343_v28  ;;  %v346_v51 = vld [vmem:[%s1400_s1 + $0x38] sm:$0xff]  ;;  %v1115_v54 = vmov 0.0  }
  0xb4   :  { %v164_v36 = vmul.f32 %v1183_v41, %v148_v60  ;;  %v165_v37 = vmul.f32 %v1185_v42, %v148_v60  ;;  %v296_v4 = vmul.f32 %v1187_v43, %v148_v60  ;;  %v297_v20 = vmul.f32 %v1206_v61, %v148_v60  ;;  %988 = vmatprep.mubr.msk.f32.mxu0 %vm1114_vm0, %v1115_v54 }
  0xb5   :  { %323 = vadd.xlane.f32.xlu1 %v322_v29  ;;  %207 = vadd.xlane.f32.xlu0 %v206_v1  ;;  %v281_v42 = vadd.f32 %v273_v11, %v257_v14  ;;  %v1038_v55 = vpack.c.bf16 %v346_v51, %v345_v34  ;;  %v542_v14 = vld [vmem:[%s1400_s1 + $0x70] sm:$0xff] }
  0xb6   :  { %v172_v24 = vadd.f32 %v164_v36, %v132_v15  ;;  %v173_v62 = vadd.f32 %v165_v37, %v133_v19  ;;  %v304_v46 = vadd.f32 %v296_v4, %v280_v39  ;;  %999 = vmatprep.mubr.msk.f32.mxu1 %vm1114_vm0, %v1115_v54  ;;  %v1047_v15 = vpack.c.bf16 %v542_v14, %v541_v12  ;;  %v462_v19 = vld [vmem:[%s1400_s1 + $0x60] sm:$0xff]  ;;  %v543_v39 = vld [vmem:[%s1400_s1 + $0x78] sm:$0xff] }
  0xb7   :  { %v305_v0 = vadd.f32 %v297_v20, %v281_v42  ;;  %v544_v20 = vld [vmem:[%s1400_s1 + $0x80] sm:$0xff] }
  0xb8   :  { %v184_v40 = vpop.permute.xlu1 %183 }
  0xb9   :  { %210 = vadd.xlane.f32.xlu0 %v209_v17  ;;  %v194_v9 = vadd.f32 %v184_v40, %v170_v18  ;;  %v195_v21 = vadd.f32 %v184_v40, %v171_v35  ;;  %v310_v41 = vadd.f32 %v302_v5, %v184_v40  ;;  %v311_v32 = vadd.f32 %v303_v38, %v184_v40  ;;  %v461_v38 = vld [vmem:[%s1400_s1 + $0x58] sm:$0xff] }
  0xba   :  { %v1113_v35 = vmov 0.0|0.0   ;;  %v1044_v4 = vpack.c.bf16 %v462_v19, %v461_v38  ;;  %v1050_v40 = vpack.c.bf16 %v544_v20, %v543_v39 }
  0xbb   :  { %v202_v63 = vmax.f32 %v194_v9, 0.0  ;;  %v203_v44 = vmax.f32 %v195_v21, 0.0  ;;  %v318_v45 = vmax.f32 %v310_v41, 0.0  ;;  %v319_v7 = vmax.f32 %v311_v32, 0.0  ;;  %1034 = vmatprep.subr.bf16.mxu0 %v1113_v35  ;;  %1040 = vmatprep.subr.bf16.mxu1 %v1113_v35  ;;  %v941_v9 = vld [vmem:[%s1400_s1 + $0x40] ss:$0 sm:$0xff] }
  0xbc   :  { %v188_v26 = vpop.permute.xlu1 %187  ;;  %1036 = vmatpush3.bf16.msra.mxu0 %v1035_v53  ;;  %1042 = vmatpush3.bf16.msra.mxu1 %v1041_v3 }
  0xbd   :  { %326 = vadd.xlane.f32.xlu0 %v325_v23  ;;  %v212_v43 = vadd.f32 %v203_v44, %v202_v63  ;;  %v196_v61 = vadd.f32 %v188_v26, %v172_v24  ;;  %v197_v22 = vadd.f32 %v188_v26, %v173_v62  ;;  %v312_v27 = vadd.f32 %v304_v46, %v188_v26  ;;  %v640_v23 = vld [vmem:[%s1400_s1 + $0xa8] sm:$0xff]  ;;  %v641_v24 = vld [vmem:[%s1400_s1 + $0xb0] sm:$0xff]  ;;  %v834_v62 = vld [vmem:[%s1400_s1 + $0x98] sm:$0xff] }
  0xbe   :  { %v313_v18 = vadd.f32 %v305_v0, %v188_v26  ;;  %v328_v47 = vadd.f32 %v319_v7, %v318_v45  ;;  %1037 = vmatprep.subr.bf16.mxu0 %v1113_v35  ;;  %1043 = vmatprep.subr.bf16.mxu1 %v1113_v35  ;;  %v1053_v63 = vpack.c.bf16 %v641_v24, %v640_v23  ;;  %v835_v44 = vld [vmem:[%s1400_s1 + $0xa0] sm:$0xff]  ;;  %v943_v7 = vld [vmem:[%s1400_s1 + $0x88] ss:$0 sm:$0xff]  ;;  %v945_v26 = vld [vmem:[%s1400_s1 + $0x90] ss:$0 sm:$0xff] }
  0xbf   :  { %213 = vadd.xlane.f32.xlu1 %v212_v43  ;;  %v204_v48 = vmax.f32 %v196_v61, 0.0  ;;  %v205_v25 = vmax.f32 %v197_v22, 0.0  ;;  %v320_v16 = vmax.f32 %v312_v27, 0.0  ;;  %v1059_v45 = vpack.c.bf16 %v835_v44, %v834_v62 }
  0xc0   :  { %v321_v49 = vmax.f32 %v313_v18, 0.0  ;;  %1039 = vmatpush3.bf16.msra.mxu0 %v1038_v55  ;;  %1045 = vmatpush3.bf16.msra.mxu1 %v1044_v4  ;;  %v13_v55 = vld [vmem:[%s1401_s0 + $0x10] sm:$0x3] }
  0xc1   :  { %329 = vadd.xlane.f32.xlu0 %v328_v47  ;;  %v215_v50 = vadd.f32 %v205_v25, %v204_v48  ;;  %1046 = vmatprep.subr.bf16.mxu0 %v1113_v35 }
  0xc2   :  { %v331_v13 = vadd.f32 %v321_v49, %v320_v16  ;;  %1052 = vmatprep.subr.bf16.mxu1 %v1113_v35 }
  0xc3   :  { %216 = vadd.xlane.f32.xlu1 %v215_v50 }
  0xc5   :  { %332 = vadd.xlane.f32.xlu0 %v331_v13 }
 0x142   :  { %v324_v56 = vpop.xlane.xlu1 %323  ;;  %v208_v57 = vpop.xlane.xlu0 %207 }
 0x143   :  { %v335_v58 = vsel %vm334_vm1, %v208_v57, %v324_v56  ;;  %v739_v57 = vld [vmem:[%s1400_s1 + $0xb8] sm:$0xff] }
 0x144   :  { %v339_v59 = vmul.f32 0.00390625, %v335_v58  ;;  %v740_v58 = vld [vmem:[%s1400_s1 + $0xc0] sm:$0xff] }
 0x146   :  { %352 = vxpose.xlu1.b32.start [1/4] (short) (narrow) %v339_v59, 8  ;;  %v211_v60 = vpop.xlane.xlu0 %210 }
 0x14a   :  { %v327_v29 = vpop.xlane.xlu0 %326 }
 0x14b   :  { %v336_v1 = vsel %vm334_vm1, %v211_v60, %v327_v29  ;;  %v1056_v29 = vpack.c.bf16 %v740_v58, %v739_v57 }
 0x14c   :  { %v340_v52 = vmul.f32 0.00390625, %v336_v1  ;;  %v214_v31 = vpop.xlane.xlu1 %213 }
 0x14e   :  { %353 = vxpose.xlu1.b32.cont [2/4] (short) (narrow) %v340_v52, 8  ;;  %v330_v5 = vpop.xlane.xlu0 %329 }
 0x14f   :  { %v337_v6 = vsel %vm334_vm1, %v214_v31, %v330_v5 }
 0x150   :  { %v341_v8 = vmul.f32 0.00390625, %v337_v6  ;;  %v217_v11 = vpop.xlane.xlu1 %216  ;;  %v951_v6 = vld [vmem:[%s1400_s1 + $0xd8] ss:$0 sm:$0xff] }
 0x152   :  { %354 = vxpose.xlu1.b32.cont [3/4] (short) (narrow) %v341_v8, 8  ;;  %v333_v36 = vpop.xlane.xlu0 %332 }
 0x153   :  { %v338_v37 = vsel %vm334_vm1, %v217_v11, %v333_v36 }
 0x154   :  { %v342_v10 = vmul.f32 0.00390625, %v338_v37 }
 0x156   :  { %355 = vxpose.xlu1.b32.end [4/4] (short) (narrow) %v342_v10, 8 }
 0x1ca   :  { %v368_v17 = vpop.trf.xlu1 }
 0x1cb   :  { %989 = vmatmul.mubr.msk.f32.vlgmr.msra.gmra.mrb[0].mxu0 %vm384_vm2, %v368_v17 }
 0x1cc   :  { %1048 = vmatpush3.bf16.msra.mxu0 %v1047_v15  ;;  %1010 = vmatprep.mubr.msk.f32.mxu0 %vm1114_vm0, %v1115_v54 }
 0x1cd   :  { %1049 = vmatprep.subr.bf16.mxu0 %v1113_v35 }
 0x1d0   :  { %1051 = vmatpush3.bf16.msra.mxu0 %v1050_v40 }
 0x1d1   :  { %1058 = vmatprep.subr.bf16.mxu0 %v1113_v35 }
 0x29e   :  { %v454_v21 = vpop.f32.mrb[0].mxu0 }
 0x29f   :  { %v455_v41 = vadd.f32 %v941_v9, %v454_v21  ;;  %v990_v32 = vpop.f32.mrb[1].mxu0 }
 0x2a1   :  { %v458_v42 = vmax.f32 %v455_v41, 0.0 }
 0x2a3   :  { %1000 = vmatmul.mubr.msk.f32.vlgmr.msra.gmra.mrb[0].mxu1 %vm384_vm2, %v458_v42  ;;  %1011 = vmatmul.mubr.msk.f32.vlgmr.msra.gmra.mrb[2].mxu0 %vm384_vm2, %v458_v42 }
 0x2a4   :  { %1017 = vmatprep.mubr.msk.f32.mxu1 %vm1114_vm0, %v1115_v54  ;;  %1031 = vmatprep.mubr.msk.f32.mxu0 %vm1114_vm0, %v1115_v54 }
 0x2a5   :  { %1054 = vmatpush3.bf16.msra.mxu1 %v1053_v63  ;;  %1060 = vmatpush3.bf16.msra.mxu0 %v1059_v45 }
 0x2a6   :  { %1055 = vmatprep.subr.bf16.mxu1 %v1113_v35 }
 0x376   :  { %v537_v46 = vpop.f32.mrb[0].mxu1  ;;  %v616_v0 = vpop.f32.mrb[2].mxu0 }
 0x377   :  { %v538_v43 = vadd.f32 %v943_v7, %v537_v46  ;;  %v617_v61 = vadd.f32 %v945_v26, %v616_v0  ;;  %v1001_v22 = vpop.f32.mrb[1].mxu1  ;;  %v1012_v27 = vpop.f32.mrb[3].mxu0 }
 0x379   :  { %v620_v18 = vand.u32 2147483647, %v617_v61  ;;  %920 = vrot.lane.b32.xlu0 %v538_v43, %s1116_s3  ;;  %v625_v53 = vmax.f32 %v617_v61, 0.0  ;;  %vm624_vm4 = vcmp.gt.f32.partialorder %v617_v61, 20.0 }
 0x37b   :  { %v621_v47 = vsub.f32 0.0, %v620_v18 }
 0x37d   :  { %v622_v48 = vmul.f32 1.442695, %v621_v47  ;;  %v954_v47 = vld [vmem:[%s1400_s1 + $0xc8] ss:$0 sm:$0xff] }
 0x37f   :  { %1090 = vpow2.f32 %v622_v48 }
 0x389   :  { %v1091_v25 = vpop.eup %1090 }
 0x38a   :  { %v626_v16 = vadd.f32 1.0, %v1091_v25 }
 0x38c   :  { %vm627_vm3 = vcmp.eq.f32.partialorder %v626_v16, 1.0  ;;  %v947_v49 = vadd.f32 -1.0, %v626_v16  ;;  %1092 = vlog2.f32 %v626_v16 }
 0x38e   :  { %v629_v50 = vsel %vm627_vm3, 1.0, %v947_v49 }
 0x38f   :  { %1094 = vrcp.f32 %v629_v50 }
 0x396   :  { %v1093_v13 = vpop.eup %1092 }
 0x397   :  { %v631_v33 = vmul.f32 0.6931472, %v1093_v13 }
 0x399   :  { %v1095_v28 = vpop.eup %1094 }
 0x39a   :  { %v633_v34 = vmul.f32 %v1095_v28, %v1091_v25 }
 0x39c   :  { %v634_v35 = vmul.f32 %v633_v34, %v631_v33 }
 0x39e   :  { %v635_v51 = vsel %vm627_vm3, %v1091_v25, %v634_v35 }
 0x39f   :  { %v636_v56 = vadd.f32 %v635_v51, %v625_v53 }
 0x3a1   :  { %v1374_v59 = vsel %vm624_vm4, %v617_v61, %v636_v56 }
 0x3a2   :  { %v638_v60 = vmul.f32 %v1374_v59, %v13_v55 }
 0x3a4   :  { %v639_v1 = vadd.f32 %v638_v60, %v538_v43 }
 0x3a6   :  { %1018 = vmatmul.mubr.msk.f32.vlgmr.msra.gmra.mrb[2].mxu1 %vm647_vm5, %v639_v1  ;;  %1032 = vmatmul.mubr.msk.f32.vlgmr.msra.gmra.mrb[4].mxu0 %vm647_vm5, %v639_v1 }
 0x3a7   :  { %1057 = vmatpush3.bf16.msra.mxu1 %v1056_v29  ;;  %1024 = vmatprep.mubr.msk.f32.mxu1 %vm1114_vm0, %v1115_v54 }
 0x3aa   :  { %1025 = vmatmul.mubr.msk.f32.vlgmr.msra.gmra.mrb[4].mxu1 %vm647_vm5, %v639_v1 }
 0x3eb   :  { %v921_v18 = vpop.permute.xlu0 %920 }
 0x479   :  { %v717_v30 = vpop.f32.mrb[2].mxu1  ;;  %v907_v52 = vpop.f32.mrb[4].mxu0 }
 0x47a   :  { %v718_v31 = vadd.f32 %v948_v2, %v717_v30  ;;  %v1019_v3 = vpop.f32.mrb[3].mxu1  ;;  %v1033_v5 = vpop.f32.mrb[5].mxu0  ;;  %v908_v25 = vadd.f32 %v954_v47, %v907_v52 }
 0x47c   :  { %v721_v8 = vand.u32 2147483647, %v718_v31  ;;  %v726_v63 = vmax.f32 %v718_v31, 0.0  ;;  %vm725_vm8 = vcmp.gt.f32.partialorder %v718_v31, 20.0 }
 0x47d   :  { %v812_v11 = vpop.f32.mrb[4].mxu1 }
 0x47e   :  { %v722_v36 = vsub.f32 0.0, %v721_v8  ;;  %v813_v37 = vadd.f32 %v951_v6, %v812_v11  ;;  %v1026_v54 = vpop.f32.mrb[5].mxu1 }
 0x480   :  { %v723_v10 = vmul.f32 1.442695, %v722_v36  ;;  %v816_v12 = vand.u32 2147483647, %v813_v37  ;;  %v821_v43 = vmax.f32 %v813_v37, 0.0  ;;  %vm820_vm9 = vcmp.gt.f32.partialorder %v813_v37, 20.0 }
 0x482   :  { %1096 = vpow2.f32 %v723_v10  ;;  %v817_v14 = vsub.f32 0.0, %v816_v12 }
 0x484   :  { %v818_v15 = vmul.f32 1.442695, %v817_v14 }
 0x486   :  { %1098 = vpow2.f32 %v818_v15 }
 0x48c   :  { %v1097_v17 = vpop.eup %1096 }
 0x48d   :  { %v727_v38 = vadd.f32 1.0, %v1097_v17 }
 0x48f   :  { %vm728_vm6 = vcmp.eq.f32.partialorder %v727_v38, 1.0  ;;  %v950_v19 = vadd.f32 -1.0, %v727_v38  ;;  %1100 = vlog2.f32 %v727_v38 }
 0x490   :  { %v1099_v39 = vpop.eup %1098 }
 0x491   :  { %v730_v4 = vsel %vm728_vm6, 1.0, %v950_v19  ;;  %v822_v20 = vadd.f32 1.0, %v1099_v39 }
 0x492   :  { %1102 = vrcp.f32 %v730_v4 }
 0x493   :  { %vm823_vm7 = vcmp.eq.f32.partialorder %v822_v20, 1.0  ;;  %v953_v40 = vadd.f32 -1.0, %v822_v20  ;;  %1104 = vlog2.f32 %v822_v20 }
 0x495   :  { %v825_v9 = vsel %vm823_vm7, 1.0, %v953_v40 }
 0x496   :  { %1106 = vrcp.f32 %v825_v9 }
 0x499   :  { %v1101_v21 = vpop.eup %1100 }
 0x49a   :  { %v732_v32 = vmul.f32 0.6931472, %v1101_v21 }
 0x49c   :  { %v1103_v41 = vpop.eup %1102 }
 0x49d   :  { %v734_v42 = vmul.f32 %v1103_v41, %v1097_v17  ;;  %v1105_v23 = vpop.eup %1104 }
 0x49e   :  { %v827_v45 = vmul.f32 0.6931472, %v1105_v23 }
 0x49f   :  { %v735_v24 = vmul.f32 %v734_v42, %v732_v32 }
 0x4a0   :  { %v1107_v62 = vpop.eup %1106 }
 0x4a1   :  { %v736_v44 = vsel %vm728_vm6, %v1097_v17, %v735_v24  ;;  %v829_v7 = vmul.f32 %v1107_v62, %v1099_v39 }
 0x4a2   :  { %v737_v26 = vadd.f32 %v736_v44, %v726_v63 }
 0x4a3   :  { %v830_v46 = vmul.f32 %v829_v7, %v827_v45 }
 0x4a4   :  { %v738_v0 = vsel %vm725_vm8, %v718_v31, %v737_v26 }
 0x4a5   :  { %912 = vrot.lane.b32.xlu0 %v738_v0, %s1117_s13  ;;  %v831_v61 = vsel %vm823_vm7, %v1099_v39, %v830_v46 }
 0x4a6   :  { %v832_v22 = vadd.f32 %v831_v61, %v821_v43 }
 0x4a8   :  { %v833_v27 = vsel %vm820_vm9, %v813_v37, %v832_v22 }
 0x4a9   :  { %916 = vrot.lane.b32.xlu0 %v833_v27, %s1118_s14 }
 0x4ad   :  { %924 = vrot.lane.b32.xlu0 %v1374_v59, %s1119_s15 }
 0x517   :  { %v913_v48 = vpop.permute.xlu0 %912 }
 0x518   :  { %v928_v16 = vsel %vm927_vm10, %v908_v25, %v913_v48 }
 0x51b   :  { %v917_v49 = vpop.permute.xlu0 %916 }
 0x51c   :  { %v929_v50 = vsel %vm647_vm5, %v928_v16, %v917_v49 }
 0x51d   :  { %v931_v28 = vsel %vm930_vm11, %v929_v50, %v921_v18 }
 0x51f   :  { %v925_v13 = vpop.permute.xlu0 %924 }
 0x520   :  { %v933_v33 = vsel %vm932_vm12, %v931_v28, %v925_v13 }
 0x521   :  { %v935_v34 = vsel %vm934_vm13, %v933_v33, 0.0 }
 0x522   :  { %936 = vst [vmem:[%s1402_s2] sm:$0x3] %v935_v34 }

</bundles_post_ra>
